<compile_context>
chip_gen: v5e
topology: v5e:2x2
jax: 0.10.0
libtpu: 0.0.40
codegen_flags: <defaults>
</compile_context>

<pallas_src>
import functools

import jax
import jax.numpy as jnp
from jax.experimental import pallas as pl
from jax.experimental.pallas import tpu as pltpu


# ---------------------------------------------------------------------------
# kernel
# ---------------------------------------------------------------------------
def _ce_kernel(x_ref, lab_ref, sum_ref, cnt_ref, *, num_classes):
    """Per-tile cross-entropy with ignore_index=-1 (any negative label).

    x_ref:   (C, PT)  logits (native dtype), classes on sublanes
    lab_ref: (1, PT)  int32 labels (negative = ignore; padded tail is -1)
    sum_ref: (1, PT)  f32 per-lane accumulated loss   (resident over t axis)
    cnt_ref: (1, PT)  f32 per-lane accumulated count  (resident over t axis)
    """
    t = pl.program_id(2)

    @pl.when(t == 0)
    def _():
        sum_ref[...] = jnp.zeros_like(sum_ref)
        cnt_ref[...] = jnp.zeros_like(cnt_ref)

    logits = x_ref[...].astype(jnp.float32)          # (C, PT)
    labels = lab_ref[...]                            # (1, PT) int32

    # numerically-stable log-sum-exp over the class (sublane) axis
    m = jnp.max(logits, axis=0, keepdims=True)                       # (1, PT)
    p = jnp.exp(logits - m)                                          # EUP

    # one-hot gather of the target-class logit; iota only along sublanes.
    # NOTE: labels >= num_classes are a caller precondition (undefined here),
    #       matching the "class index must be < C" contract of CrossEntropyLoss.
    cls_ids = jax.lax.broadcasted_iota(jnp.int32, (num_classes, 1), 0)
    onehot = cls_ids == labels                                       # (C, PT)
    masked = jnp.where(onehot, logits, 0.0)                          # true select

    # MXU offload of the two class-axis reductions (frees the VALU slot).
    ones_lhs = jnp.ones((8, num_classes), jnp.float32)
    sum_exp = jnp.dot(ones_lhs, p, preferred_element_type=jnp.float32)[0:1, :]
    logit_c = jnp.dot(ones_lhs, masked, preferred_element_type=jnp.float32)[0:1, :]

    lse = m + jnp.log(sum_exp)                                       # (1, PT)

    # validity: ignore_index (-1) and padded / phantom-tile lanes are negative.
    valid = labels >= 0                                              # (1, PT)
    # keep jnp.where as a true select: garbage OOB logits must not leak.
    sum_ref[...] += jnp.where(valid, lse - logit_c, 0.0)
    cnt_ref[...] += valid.astype(jnp.float32)


# ---------------------------------------------------------------------------
# wrapper
# ---------------------------------------------------------------------------
def _choose_pix_tile(num_pix, num_classes, itemsize):
    """Largest lane tile whose full double-buffered working set fits ~24 MiB
    (safe under the explicit 32 MiB scoped-VMEM limit on v5e/v6e/v7x)."""
    LANE = 128
    MAX_PT = 65536
    LOGITS_BLOCK_BUDGET = 8 * 1024 * 1024       # per logits block (v7x guidance)
    PIPELINE_BUDGET = 24 * 1024 * 1024          # total double-buffered working set

    if num_pix <= LANE:
        return num_pix

    # bytes per lane pixel, counting double-buffering and the 8-sublane padding
    # of the (1, PT) label / sum / cnt buffers (32 B each per pixel).
    per_pix = (2 * num_classes * itemsize       # logits, double-buffered
               + 2 * 8 * 4                      # int32 labels, padded to 8 sublanes
               + 2 * 2 * 8 * 4)                 # f32 sum + cnt outputs
    pt = min(PIPELINE_BUDGET // per_pix,
             LOGITS_BLOCK_BUDGET // max(1, num_classes * itemsize),
             MAX_PT)
    pt = max(LANE, (pt // LANE) * LANE)
    if pt >= num_pix:
        return num_pix          # full pixel axis in a single (full-extent) block
    return pt                   # multiple of 128; labels are padded in wrapper


def _ce_sums_pallas(logits_ncp, labels_n1p, pix_tile=None):
    """(sum_of_losses, valid_count) over all pixels of all batch elements."""
    n, c, num_pix = logits_ncp.shape
    itemsize = jnp.dtype(logits_ncp.dtype).itemsize
    pt = pix_tile if pix_tile is not None else _choose_pix_tile(num_pix, c, itemsize)

    tiles_total = -(-num_pix // pt)
    # second "parallel" axis over pixel super-chunks (v7x: 2 TCs even if N==1)
    n_chunks = 2 if tiles_total >= 2 else 1
    tpc = -(-tiles_total // n_chunks)            # tiles per chunk
    padded_pix = n_chunks * tpc * pt
    last_tile = tiles_total - 1

    if padded_pix != num_pix:
        labels_n1p = jnp.pad(
            labels_n1p, ((0, 0), (0, 0), (0, padded_pix - num_pix)),
            constant_values=-1)

    kernel = functools.partial(_ce_kernel, num_classes=c)
    grid = (n, n_chunks, tpc)

    out_sum, out_cnt = pl.pallas_call(
        kernel,
        out_shape=(
            jax.ShapeDtypeStruct((n, n_chunks, 1, pt), jnp.float32),
            jax.ShapeDtypeStruct((n, n_chunks, 1, pt), jnp.float32),
        ),
        grid=grid,
        in_specs=[
            # clamp phantom tiles onto the last real tile (their labels are -1,
            # so they contribute nothing); also skips a redundant DMA.
            pl.BlockSpec((None, c, pt),
                         lambda i, ch, t: (i, 0, jnp.minimum(ch * tpc + t, last_tile))),
            pl.BlockSpec((None, 1, pt),
                         lambda i, ch, t: (i, 0, ch * tpc + t)),
        ],
        out_specs=(
            pl.BlockSpec((None, None, 1, pt), lambda i, ch, t: (i, ch, 0, 0)),
            pl.BlockSpec((None, None, 1, pt), lambda i, ch, t: (i, ch, 0, 0)),
        ),
        compiler_params=pltpu.CompilerParams(
            dimension_semantics=("parallel", "parallel", "arbitrary"),
            vmem_limit_bytes=32 * 1024 * 1024,
        ),
        cost_estimate=pl.CostEstimate(
            flops=8 * n * c * padded_pix,
            transcendentals=n * (c + 1) * padded_pix,
            bytes_accessed=(n * c * num_pix * itemsize          # logits stream
                            + n * padded_pix * 4                # labels
                            + 2 * n * n_chunks * pt * 4),       # accumulators
        ),
    )(logits_ncp, labels_n1p)

    return jnp.sum(out_sum), jnp.sum(out_cnt)


def _scale_target(targets_nhw, out_h, out_w):
    """FSCELoss._scale_target: legacy nearest-neighbor resize.

    The -2 -> -1 remap of the original is dropped: the kernel treats every
    negative label as ignore_index, so the semantics are unchanged.
    """
    _, h, w = targets_nhw.shape
    if (out_h, out_w) == (h, w):
        return targets_nhw.astype(jnp.int32)                 # identity fast path
    if h % out_h == 0 and w % out_w == 0:
        # integer downscale factor: floor(i*h/out_h) == i*(h//out_h)
        return targets_nhw[:, ::h // out_h, ::w // out_w].astype(jnp.int32)
    rows = (jnp.arange(out_h) * h) // out_h                   # floor(i * in / out)
    cols = (jnp.arange(out_w) * w) // out_w
    return targets_nhw[:, rows[:, None], cols[None, :]].astype(jnp.int32)


def _fs_ce_loss(logits_nchw, targets_nhw):
    """nn.CrossEntropyLoss(ignore_index=-1, reduction='mean') on NCHW logits."""
    n, c, h, w = logits_nchw.shape
    target = _scale_target(targets_nhw, h, w)                 # (N, h, w)
    x = logits_nchw.reshape(n, c, h * w)                      # free reshape
    lab = target.reshape(n, 1, h * w)                         # free reshape
    s, cnt = _ce_sums_pallas(x, lab)
    # NOTE: all-ignore batches give 0/0 = NaN, matching PyTorch 'mean' behavior.
    return s / cnt


@functools.partial(jax.jit, static_argnames=("seg_w", "aux_w"))
def fs_aux_ce_loss(aux_out, seg_out, targets, seg_w=1.0, aux_w=0.4):
    """FSAuxCELoss.forward: loss = seg_w * CE(seg_out) + aux_w * CE(aux_out)."""
    seg_loss = _fs_ce_loss(seg_out, targets)
    aux_loss = _fs_ce_loss(aux_out, targets)
    return seg_w * seg_loss + aux_w * aux_loss


# ---------------------------------------------------------------------------
# pure-JAX references (sanity check only)
# ---------------------------------------------------------------------------
def _ref_ce(logits_nchw, targets_nhw):
    n, c, h, w = logits_nchw.shape
    t = _scale_target(targets_nhw, h, w).reshape(-1)
    x = jnp.transpose(logits_nchw, (0, 2, 3, 1)).reshape(-1, c).astype(jnp.float32)
    lse = jax.scipy.special.logsumexp(x, axis=-1)
    logit_c = jnp.take_along_axis(x, jnp.clip(t, 0)[:, None], axis=-1)[:, 0]
    valid = (t >= 0).astype(jnp.float32)
    return jnp.sum((lse - logit_c) * valid) / jnp.sum(valid)


def _ref_fs_aux(aux_out, seg_out, targets, seg_w=1.0, aux_w=0.4):
    return seg_w * _ref_ce(seg_out, targets) + aux_w * _ref_ce(aux_out, targets)


def _ref_sums(logits_ncp, labels_n1p):
    x = logits_ncp.astype(jnp.float32)
    lab = labels_n1p[:, 0, :]
    lse = jax.scipy.special.logsumexp(x, axis=1)                       # (N, P)
    lc = jnp.take_along_axis(x, jnp.clip(lab, 0)[:, None, :], axis=1)[:, 0, :]
    valid = lab >= 0
    return (jnp.sum(jnp.where(valid, lse - lc, 0.0)),
            jnp.sum(valid.astype(jnp.float32)))


if __name__ == "__main__":
    key = jax.random.PRNGKey(0)
    k1, k2, k3, k4, k5 = jax.random.split(key, 5)

    # --- end-to-end FSAuxCELoss test (small shapes) ----------------------
    N, C, H, W = 2, 8, 16, 16
    # seg head at full resolution, aux head at half resolution (exercises the
    # nearest-neighbor target rescaling of FSCELoss._scale_target)
    seg_out = jax.random.normal(k1, (N, C, H, W), dtype=jnp.float32)
    aux_out = jax.random.normal(k2, (N, C, H // 2, W // 2), dtype=jnp.float32)
    # targets in [-2, C-1]: -2 and -1 are both ignored (matches -2->-1 remap)
    targets = jax.random.randint(k3, (N, H, W), minval=-2, maxval=C).astype(jnp.int32)

    seg_w, aux_w = 1.0, 0.4   # loss_weights from configer('network','loss_weights')
    loss = fs_aux_ce_loss(aux_out, seg_out, targets, seg_w=seg_w, aux_w=aux_w)
    loss = jax.block_until_ready(loss)
    ref = _ref_fs_aux(aux_out, seg_out, targets, seg_w=seg_w, aux_w=aux_w)
    assert jnp.allclose(loss, ref, rtol=1e-5, atol=1e-5), (loss, ref)

    # --- tiled / chunked path test: forced small pixel tile, ragged C ----
    # 384 pixels @ tile 128 -> 3 tiles -> 2 chunks of 2 tiles (one phantom tile,
    # clamped index_map + -1-padded labels), plus C=5 non-multiple-of-8 sublanes.
    n2, c2, p2 = 2, 5, 384
    x2 = jax.random.normal(k4, (n2, c2, p2), dtype=jnp.float32)
    l2 = jax.random.randint(k5, (n2, 1, p2), minval=-1, maxval=c2).astype(jnp.int32)
    s2, cnt2 = _ce_sums_pallas(x2, l2, pix_tile=128)
    s2 = jax.block_until_ready(s2)
    rs2, rc2 = _ref_sums(x2, l2)
    assert jnp.allclose(s2, rs2, rtol=1e-5, atol=1e-4), (s2, rs2)
    assert jnp.allclose(cnt2, rc2), (cnt2, rc2)

    print("KERNEL_OK")
</pallas_src>

<mosaic_0001>
module attributes {stable_mosaic.version = 11 : i64} {
  func.func @_ce_kernel(%arg0: i32, %arg1: i32, %arg2: i32, %arg3: memref<1x8x256xf32, #tpu.memory_space<vmem>>, %arg4: memref<1x1x256xi32, #tpu.memory_space<vmem>>, %arg5: memref<1x1x1x256xf32, #tpu.memory_space<vmem>>, %arg6: memref<1x1x1x256xf32, #tpu.memory_space<vmem>>) attributes {dimension_semantics = [#tpu.dimension_semantics<parallel>, #tpu.dimension_semantics<parallel>, #tpu.dimension_semantics<arbitrary>], iteration_bounds = array<i64: 2, 1, 1>, scalar_prefetch = 0 : i64, scratch_operands = 0 : i64, tpu.core_type = #tpu.core_type<tc>, window_params = [{transform_indices = @transform_0, window_bounds = array<i64: 1, 8, 256>}, {transform_indices = @transform_1, window_bounds = array<i64: 1, 1, 256>}, {transform_indices = @transform_2, window_bounds = array<i64: 1, 1, 1, 256>}, {transform_indices = @transform_3, window_bounds = array<i64: 1, 1, 1, 256>}]} {
    %c0_i32 = arith.constant 0 : i32
    %0 = arith.cmpi eq, %arg2, %c0_i32 : i32
    %1 = arith.extui %0 : i1 to i32
    %c0_i32_0 = arith.constant 0 : i32
    %2 = arith.cmpi ne, %1, %c0_i32_0 : i32
    scf.if %2 {
      %cst_28 = arith.constant 0.000000e+00 : f32
      %44 = vector.broadcast %cst_28 : f32 to vector<1x256xf32>
      %c0_29 = arith.constant 0 : index
      %c0_30 = arith.constant 0 : index
      %c0_31 = arith.constant 0 : index
      %c0_32 = arith.constant 0 : index
      %45 = vector.load %arg5[%c0_29, %c0_30, %c0_31, %c0_32] : memref<1x1x1x256xf32, #tpu.memory_space<vmem>>, vector<1x1x1x256xf32>
      %46 = vector.shape_cast %45 : vector<1x1x1x256xf32> to vector<1x256xf32>
      %47 = vector.shape_cast %44 : vector<1x256xf32> to vector<1x1x1x256xf32>
      tpu.vector_store %arg5[%c0_29, %c0_30, %c0_31, %c0_32], %47 {strides = array<i32>} : memref<1x1x1x256xf32, #tpu.memory_space<vmem>>, vector<1x1x1x256xf32>,
      %cst_33 = arith.constant 0.000000e+00 : f32
      %48 = vector.broadcast %cst_33 : f32 to vector<1x256xf32>
      %c0_34 = arith.constant 0 : index
      %c0_35 = arith.constant 0 : index
      %c0_36 = arith.constant 0 : index
      %c0_37 = arith.constant 0 : index
      %49 = vector.load %arg6[%c0_34, %c0_35, %c0_36, %c0_37] : memref<1x1x1x256xf32, #tpu.memory_space<vmem>>, vector<1x1x1x256xf32>
      %50 = vector.shape_cast %49 : vector<1x1x1x256xf32> to vector<1x256xf32>
      %51 = vector.shape_cast %48 : vector<1x256xf32> to vector<1x1x1x256xf32>
      tpu.vector_store %arg6[%c0_34, %c0_35, %c0_36, %c0_37], %51 {strides = array<i32>} : memref<1x1x1x256xf32, #tpu.memory_space<vmem>>, vector<1x1x1x256xf32>,
    } else {
    }
    %c0 = arith.constant 0 : index
    %c0_1 = arith.constant 0 : index
    %c0_2 = arith.constant 0 : index
    %3 = vector.load %arg3[%c0, %c0_1, %c0_2] : memref<1x8x256xf32, #tpu.memory_space<vmem>>, vector<1x8x256xf32>
    %4 = vector.shape_cast %3 : vector<1x8x256xf32> to vector<8x256xf32>
    %c0_3 = arith.constant 0 : index
    %c0_4 = arith.constant 0 : index
    %c0_5 = arith.constant 0 : index
    %5 = vector.load %arg4[%c0_3, %c0_4, %c0_5] : memref<1x1x256xi32, #tpu.memory_space<vmem>>, vector<1x1x256xi32>
    %6 = vector.shape_cast %5 : vector<1x1x256xi32> to vector<1x256xi32>
    %cst = arith.constant dense<0xFF800000> : vector<256xf32>
    %7 = vector.multi_reduction <maximumf>, %4, %cst [0] : vector<8x256xf32> to vector<256xf32>
    %8 = vector.shape_cast %7 : vector<256xf32> to vector<1x256xf32>
    %9 = vector.broadcast %8 : vector<1x256xf32> to vector<8x256xf32>
    %10 = arith.subf %4, %9 : vector<8x256xf32>
    %11 = math.exp %10 : vector<8x256xf32>
    %12 = tpu.iota {dimensions = array<i32: 0>} : vector<8x1xi32>
    %13 = vector.broadcast %12 : vector<8x1xi32> to vector<8x256xi32>
    %14 = vector.broadcast %6 : vector<1x256xi32> to vector<8x256xi32>
    %15 = arith.cmpi eq, %13, %14 : vector<8x256xi32>
    %cst_6 = arith.constant 0.000000e+00 : f32
    %16 = vector.broadcast %cst_6 : f32 to vector<8x256xf32>
    %17 = arith.select %15, %4, %16 : vector<8x256xi1>, vector<8x256xf32>
    %cst_7 = arith.constant 1.000000e+00 : f32
    %18 = vector.broadcast %cst_7 : f32 to vector<8x8xf32>
    %cst_8 = arith.constant dense<0.000000e+00> : vector<8x256xf32>
    %19 = tpu.matmul %18, %11, %cst_8 {dimension_numbers = #tpu.dot_dimension_numbers<[1], [0], [0], [1], [0, 0, 1, 1], [], []>} : vector<8x8xf32>, vector<8x256xf32>, vector<8x256xf32> -> vector<8x256xf32>
    %20 = vector.extract_strided_slice %19 {offsets = [0, 0], sizes = [1, 256], strides = [1, 1]} : vector<8x256xf32> to vector<1x256xf32>
    %cst_9 = arith.constant dense<0.000000e+00> : vector<8x256xf32>
    %21 = tpu.matmul %18, %17, %cst_9 {dimension_numbers = #tpu.dot_dimension_numbers<[1], [0], [0], [1], [0, 0, 1, 1], [], []>} : vector<8x8xf32>, vector<8x256xf32>, vector<8x256xf32> -> vector<8x256xf32>
    %22 = vector.extract_strided_slice %21 {offsets = [0, 0], sizes = [1, 256], strides = [1, 1]} : vector<8x256xf32> to vector<1x256xf32>
    %23 = math.log %20 : vector<1x256xf32>
    %24 = arith.addf %8, %23 : vector<1x256xf32>
    %c0_i32_10 = arith.constant 0 : i32
    %25 = vector.broadcast %c0_i32_10 : i32 to vector<1x256xi32>
    %26 = arith.cmpi sge, %6, %25 : vector<1x256xi32>
    %c0_11 = arith.constant 0 : index
    %c0_12 = arith.constant 0 : index
    %c0_13 = arith.constant 0 : index
    %c0_14 = arith.constant 0 : index
    %27 = vector.load %arg5[%c0_11, %c0_12, %c0_13, %c0_14] : memref<1x1x1x256xf32, #tpu.memory_space<vmem>>, vector<1x1x1x256xf32>
    %28 = vector.shape_cast %27 : vector<1x1x1x256xf32> to vector<1x256xf32>
    %29 = arith.subf %24, %22 : vector<1x256xf32>
    %cst_15 = arith.constant 0.000000e+00 : f32
    %30 = vector.broadcast %cst_15 : f32 to vector<1x256xf32>
    %31 = arith.select %26, %29, %30 : vector<1x256xi1>, vector<1x256xf32>
    %32 = arith.addf %28, %31 : vector<1x256xf32>
    %c0_16 = arith.constant 0 : index
    %c0_17 = arith.constant 0 : index
    %c0_18 = arith.constant 0 : index
    %c0_19 = arith.constant 0 : index
    %33 = vector.load %arg5[%c0_16, %c0_17, %c0_18, %c0_19] : memref<1x1x1x256xf32, #tpu.memory_space<vmem>>, vector<1x1x1x256xf32>
    %34 = vector.shape_cast %33 : vector<1x1x1x256xf32> to vector<1x256xf32>
    %35 = vector.shape_cast %32 : vector<1x256xf32> to vector<1x1x1x256xf32>
    tpu.vector_store %arg5[%c0_16, %c0_17, %c0_18, %c0_19], %35 {strides = array<i32>} : memref<1x1x1x256xf32, #tpu.memory_space<vmem>>, vector<1x1x1x256xf32>,
    %c0_20 = arith.constant 0 : index
    %c0_21 = arith.constant 0 : index
    %c0_22 = arith.constant 0 : index
    %c0_23 = arith.constant 0 : index
    %36 = vector.load %arg6[%c0_20, %c0_21, %c0_22, %c0_23] : memref<1x1x1x256xf32, #tpu.memory_space<vmem>>, vector<1x1x1x256xf32>
    %37 = vector.shape_cast %36 : vector<1x1x1x256xf32> to vector<1x256xf32>
    %38 = arith.extui %26 : vector<1x256xi1> to vector<1x256xi32>
    %39 = arith.sitofp %38 : vector<1x256xi32> to vector<1x256xf32>
    %40 = arith.addf %37, %39 : vector<1x256xf32>
    %c0_24 = arith.constant 0 : index
    %c0_25 = arith.constant 0 : index
    %c0_26 = arith.constant 0 : index
    %c0_27 = arith.constant 0 : index
    %41 = vector.load %arg6[%c0_24, %c0_25, %c0_26, %c0_27] : memref<1x1x1x256xf32, #tpu.memory_space<vmem>>, vector<1x1x1x256xf32>
    %42 = vector.shape_cast %41 : vector<1x1x1x256xf32> to vector<1x256xf32>
    %43 = vector.shape_cast %40 : vector<1x256xf32> to vector<1x1x1x256xf32>
    tpu.vector_store %arg6[%c0_24, %c0_25, %c0_26, %c0_27], %43 {strides = array<i32>} : memref<1x1x1x256xf32, #tpu.memory_space<vmem>>, vector<1x1x1x256xf32>,
    return
  }
  func.func @transform_0(%arg0: i32, %arg1: i32, %arg2: i32) -> (i32, i32, i32) {
    %c1_i32 = arith.constant 1 : i32
    %0 = arith.muli %arg1, %c1_i32 : i32
    %1 = arith.addi %0, %arg2 : i32
    %c0_i32 = arith.constant 0 : i32
    %2 = arith.minsi %1, %c0_i32 : i32
    %c0_i32_0 = arith.constant 0 : i32
    %c0_i32_1 = arith.constant 0 : i32
    return %arg0, %c0_i32_0, %2 : i32, i32, i32
  }
  func.func @transform_1(%arg0: i32, %arg1: i32, %arg2: i32) -> (i32, i32, i32) {
    %c1_i32 = arith.constant 1 : i32
    %0 = arith.muli %arg1, %c1_i32 : i32
    %1 = arith.addi %0, %arg2 : i32
    %c0_i32 = arith.constant 0 : i32
    %c0_i32_0 = arith.constant 0 : i32
    return %arg0, %c0_i32, %1 : i32, i32, i32
  }
  func.func @transform_2(%arg0: i32, %arg1: i32, %arg2: i32) -> (i32, i32, i32, i32) {
    %c0_i32 = arith.constant 0 : i32
    %c0_i32_0 = arith.constant 0 : i32
    %c0_i32_1 = arith.constant 0 : i32
    return %arg0, %arg1, %c0_i32, %c0_i32_0 : i32, i32, i32, i32
  }
  func.func @transform_3(%arg0: i32, %arg1: i32, %arg2: i32) -> (i32, i32, i32, i32) {
    %c0_i32 = arith.constant 0 : i32
    %c0_i32_0 = arith.constant 0 : i32
    %c0_i32_1 = arith.constant 0 : i32
    return %arg0, %arg1, %c0_i32, %c0_i32_0 : i32, i32, i32, i32
  }
}

module attributes {stable_mosaic.version = 11 : i64} {
  func.func @_ce_kernel(%arg0: i32, %arg1: i32, %arg2: i32, %arg3: memref<1x8x64xf32, #tpu.memory_space<vmem>>, %arg4: memref<1x1x64xi32, #tpu.memory_space<vmem>>, %arg5: memref<1x1x1x64xf32, #tpu.memory_space<vmem>>, %arg6: memref<1x1x1x64xf32, #tpu.memory_space<vmem>>) attributes {dimension_semantics = [#tpu.dimension_semantics<parallel>, #tpu.dimension_semantics<parallel>, #tpu.dimension_semantics<arbitrary>], iteration_bounds = array<i64: 2, 1, 1>, scalar_prefetch = 0 : i64, scratch_operands = 0 : i64, tpu.core_type = #tpu.core_type<tc>, window_params = [{transform_indices = @transform_0, window_bounds = array<i64: 1, 8, 64>}, {transform_indices = @transform_1, window_bounds = array<i64: 1, 1, 64>}, {transform_indices = @transform_2, window_bounds = array<i64: 1, 1, 1, 64>}, {transform_indices = @transform_3, window_bounds = array<i64: 1, 1, 1, 64>}]} {
    %c0_i32 = arith.constant 0 : i32
    %0 = arith.cmpi eq, %arg2, %c0_i32 : i32
    %1 = arith.extui %0 : i1 to i32
    %c0_i32_0 = arith.constant 0 : i32
    %2 = arith.cmpi ne, %1, %c0_i32_0 : i32
    scf.if %2 {
      %cst_28 = arith.constant 0.000000e+00 : f32
      %44 = vector.broadcast %cst_28 : f32 to vector<1x64xf32>
      %c0_29 = arith.constant 0 : index
      %c0_30 = arith.constant 0 : index
      %c0_31 = arith.constant 0 : index
      %c0_32 = arith.constant 0 : index
      %45 = vector.load %arg5[%c0_29, %c0_30, %c0_31, %c0_32] : memref<1x1x1x64xf32, #tpu.memory_space<vmem>>, vector<1x1x1x64xf32>
      %46 = vector.shape_cast %45 : vector<1x1x1x64xf32> to vector<1x64xf32>
      %47 = vector.shape_cast %44 : vector<1x64xf32> to vector<1x1x1x64xf32>
      tpu.vector_store %arg5[%c0_29, %c0_30, %c0_31, %c0_32], %47 {strides = array<i32>} : memref<1x1x1x64xf32, #tpu.memory_space<vmem>>, vector<1x1x1x64xf32>,
      %cst_33 = arith.constant 0.000000e+00 : f32
      %48 = vector.broadcast %cst_33 : f32 to vector<1x64xf32>
      %c0_34 = arith.constant 0 : index
      %c0_35 = arith.constant 0 : index
      %c0_36 = arith.constant 0 : index
      %c0_37 = arith.constant 0 : index
      %49 = vector.load %arg6[%c0_34, %c0_35, %c0_36, %c0_37] : memref<1x1x1x64xf32, #tpu.memory_space<vmem>>, vector<1x1x1x64xf32>
      %50 = vector.shape_cast %49 : vector<1x1x1x64xf32> to vector<1x64xf32>
      %51 = vector.shape_cast %48 : vector<1x64xf32> to vector<1x1x1x64xf32>
      tpu.vector_store %arg6[%c0_34, %c0_35, %c0_36, %c0_37], %51 {strides = array<i32>} : memref<1x1x1x64xf32, #tpu.memory_space<vmem>>, vector<1x1x1x64xf32>,
    } else {
    }
    %c0 = arith.constant 0 : index
    %c0_1 = arith.constant 0 : index
    %c0_2 = arith.constant 0 : index
    %3 = vector.load %arg3[%c0, %c0_1, %c0_2] : memref<1x8x64xf32, #tpu.memory_space<vmem>>, vector<1x8x64xf32>
    %4 = vector.shape_cast %3 : vector<1x8x64xf32> to vector<8x64xf32>
    %c0_3 = arith.constant 0 : index
    %c0_4 = arith.constant 0 : index
    %c0_5 = arith.constant 0 : index
    %5 = vector.load %arg4[%c0_3, %c0_4, %c0_5] : memref<1x1x64xi32, #tpu.memory_space<vmem>>, vector<1x1x64xi32>
    %6 = vector.shape_cast %5 : vector<1x1x64xi32> to vector<1x64xi32>
    %cst = arith.constant dense<0xFF800000> : vector<64xf32>
    %7 = vector.multi_reduction <maximumf>, %4, %cst [0] : vector<8x64xf32> to vector<64xf32>
    %8 = vector.shape_cast %7 : vector<64xf32> to vector<1x64xf32>
    %9 = vector.broadcast %8 : vector<1x64xf32> to vector<8x64xf32>
    %10 = arith.subf %4, %9 : vector<8x64xf32>
    %11 = math.exp %10 : vector<8x64xf32>
    %12 = tpu.iota {dimensions = array<i32: 0>} : vector<8x1xi32>
    %13 = vector.broadcast %12 : vector<8x1xi32> to vector<8x64xi32>
    %14 = vector.broadcast %6 : vector<1x64xi32> to vector<8x64xi32>
    %15 = arith.cmpi eq, %13, %14 : vector<8x64xi32>
    %cst_6 = arith.constant 0.000000e+00 : f32
    %16 = vector.broadcast %cst_6 : f32 to vector<8x64xf32>
    %17 = arith.select %15, %4, %16 : vector<8x64xi1>, vector<8x64xf32>
    %cst_7 = arith.constant 1.000000e+00 : f32
    %18 = vector.broadcast %cst_7 : f32 to vector<8x8xf32>
    %cst_8 = arith.constant dense<0.000000e+00> : vector<8x64xf32>
    %19 = tpu.matmul %18, %11, %cst_8 {dimension_numbers = #tpu.dot_dimension_numbers<[1], [0], [0], [1], [0, 0, 1, 1], [], []>} : vector<8x8xf32>, vector<8x64xf32>, vector<8x64xf32> -> vector<8x64xf32>
    %20 = vector.extract_strided_slice %19 {offsets = [0, 0], sizes = [1, 64], strides = [1, 1]} : vector<8x64xf32> to vector<1x64xf32>
    %cst_9 = arith.constant dense<0.000000e+00> : vector<8x64xf32>
    %21 = tpu.matmul %18, %17, %cst_9 {dimension_numbers = #tpu.dot_dimension_numbers<[1], [0], [0], [1], [0, 0, 1, 1], [], []>} : vector<8x8xf32>, vector<8x64xf32>, vector<8x64xf32> -> vector<8x64xf32>
    %22 = vector.extract_strided_slice %21 {offsets = [0, 0], sizes = [1, 64], strides = [1, 1]} : vector<8x64xf32> to vector<1x64xf32>
    %23 = math.log %20 : vector<1x64xf32>
    %24 = arith.addf %8, %23 : vector<1x64xf32>
    %c0_i32_10 = arith.constant 0 : i32
    %25 = vector.broadcast %c0_i32_10 : i32 to vector<1x64xi32>
    %26 = arith.cmpi sge, %6, %25 : vector<1x64xi32>
    %c0_11 = arith.constant 0 : index
    %c0_12 = arith.constant 0 : index
    %c0_13 = arith.constant 0 : index
    %c0_14 = arith.constant 0 : index
    %27 = vector.load %arg5[%c0_11, %c0_12, %c0_13, %c0_14] : memref<1x1x1x64xf32, #tpu.memory_space<vmem>>, vector<1x1x1x64xf32>
    %28 = vector.shape_cast %27 : vector<1x1x1x64xf32> to vector<1x64xf32>
    %29 = arith.subf %24, %22 : vector<1x64xf32>
    %cst_15 = arith.constant 0.000000e+00 : f32
    %30 = vector.broadcast %cst_15 : f32 to vector<1x64xf32>
    %31 = arith.select %26, %29, %30 : vector<1x64xi1>, vector<1x64xf32>
    %32 = arith.addf %28, %31 : vector<1x64xf32>
    %c0_16 = arith.constant 0 : index
    %c0_17 = arith.constant 0 : index
    %c0_18 = arith.constant 0 : index
    %c0_19 = arith.constant 0 : index
    %33 = vector.load %arg5[%c0_16, %c0_17, %c0_18, %c0_19] : memref<1x1x1x64xf32, #tpu.memory_space<vmem>>, vector<1x1x1x64xf32>
    %34 = vector.shape_cast %33 : vector<1x1x1x64xf32> to vector<1x64xf32>
    %35 = vector.shape_cast %32 : vector<1x64xf32> to vector<1x1x1x64xf32>
    tpu.vector_store %arg5[%c0_16, %c0_17, %c0_18, %c0_19], %35 {strides = array<i32>} : memref<1x1x1x64xf32, #tpu.memory_space<vmem>>, vector<1x1x1x64xf32>,
    %c0_20 = arith.constant 0 : index
    %c0_21 = arith.constant 0 : index
    %c0_22 = arith.constant 0 : index
    %c0_23 = arith.constant 0 : index
    %36 = vector.load %arg6[%c0_20, %c0_21, %c0_22, %c0_23] : memref<1x1x1x64xf32, #tpu.memory_space<vmem>>, vector<1x1x1x64xf32>
    %37 = vector.shape_cast %36 : vector<1x1x1x64xf32> to vector<1x64xf32>
    %38 = arith.extui %26 : vector<1x64xi1> to vector<1x64xi32>
    %39 = arith.sitofp %38 : vector<1x64xi32> to vector<1x64xf32>
    %40 = arith.addf %37, %39 : vector<1x64xf32>
    %c0_24 = arith.constant 0 : index
    %c0_25 = arith.constant 0 : index
    %c0_26 = arith.constant 0 : index
    %c0_27 = arith.constant 0 : index
    %41 = vector.load %arg6[%c0_24, %c0_25, %c0_26, %c0_27] : memref<1x1x1x64xf32, #tpu.memory_space<vmem>>, vector<1x1x1x64xf32>
    %42 = vector.shape_cast %41 : vector<1x1x1x64xf32> to vector<1x64xf32>
    %43 = vector.shape_cast %40 : vector<1x64xf32> to vector<1x1x1x64xf32>
    tpu.vector_store %arg6[%c0_24, %c0_25, %c0_26, %c0_27], %43 {strides = array<i32>} : memref<1x1x1x64xf32, #tpu.memory_space<vmem>>, vector<1x1x1x64xf32>,
    return
  }
  func.func @transform_0(%arg0: i32, %arg1: i32, %arg2: i32) -> (i32, i32, i32) {
    %c1_i32 = arith.constant 1 : i32
    %0 = arith.muli %arg1, %c1_i32 : i32
    %1 = arith.addi %0, %arg2 : i32
    %c0_i32 = arith.constant 0 : i32
    %2 = arith.minsi %1, %c0_i32 : i32
    %c0_i32_0 = arith.constant 0 : i32
    %c0_i32_1 = arith.constant 0 : i32
    return %arg0, %c0_i32_0, %2 : i32, i32, i32
  }
  func.func @transform_1(%arg0: i32, %arg1: i32, %arg2: i32) -> (i32, i32, i32) {
    %c1_i32 = arith.constant 1 : i32
    %0 = arith.muli %arg1, %c1_i32 : i32
    %1 = arith.addi %0, %arg2 : i32
    %c0_i32 = arith.constant 0 : i32
    %c0_i32_0 = arith.constant 0 : i32
    return %arg0, %c0_i32, %1 : i32, i32, i32
  }
  func.func @transform_2(%arg0: i32, %arg1: i32, %arg2: i32) -> (i32, i32, i32, i32) {
    %c0_i32 = arith.constant 0 : i32
    %c0_i32_0 = arith.constant 0 : i32
    %c0_i32_1 = arith.constant 0 : i32
    return %arg0, %arg1, %c0_i32, %c0_i32_0 : i32, i32, i32, i32
  }
  func.func @transform_3(%arg0: i32, %arg1: i32, %arg2: i32) -> (i32, i32, i32, i32) {
    %c0_i32 = arith.constant 0 : i32
    %c0_i32_0 = arith.constant 0 : i32
    %c0_i32_1 = arith.constant 0 : i32
    return %arg0, %arg1, %c0_i32, %c0_i32_0 : i32, i32, i32, i32
  }
}

</mosaic_0001>

<bundles_post_ra>
// kernel: fs_aux_ce_loss.3
= control target key start
LH: loop header
LB: loop body
LE: loop exit
PB: predicated region body
PF: predicated region fallthrough
CT: control target
= control target key end

     0   :  { %s563_s12 = smov 0   ;;  %s565_s13 = smov 0   ;;  %s606_s0 = inlined_call_operand.vmem [shape: f32[2,8,64], index: 0, kind: input, shape index: {}]   ;;  %s607_s1 = inlined_call_operand.vmem [shape: s32[2,1,64], index: 1, kind: input, shape index: {}]   ;;  %s608_s2 = inlined_call_operand.vmem [shape: f32[2,1,1,64], index: 2, kind: output, shape index: {0}]   ;;  %s609_s3 = inlined_call_operand.vmem [shape: f32[2,1,1,64], index: 3, kind: output, shape index: {1}]  }
   0x1   :  { %s567_s14 = smov 0  }
   0x2 LB: > { %s33_s15 = sadd.s32 1, %s535_s13  ;;  %p478_p0 = scmp.ge.s32.totalorder %s539_s14, 1  ;;  %s539_s14 = sphi %s567_s14, %s14_s14   ;;  %s535_s13 = sphi %s565_s13, %s611_s13   ;;  %s531_s12 = sphi %s563_s12, %s610_s12  }
   0x3   : > { %p35_p1 = scmp.ge.s32.totalorder %s33_s15, 2  ;;  %p196_p2 = scmp.lt.s32.totalorder %s539_s14, 3 }
   0x5   : > { %s613_s15 = smov (%p35_p1, %s33_s15), 0  ;;  %p197_p3 = pnand %p478_p0, %p196_p2 }
   0x6   : > { %p242_p4 = scmp.lt.s32.totalorder (!%p197_p3), %s531_s12, 1 }
   0x7   : > { %200 = sbr.rel (%p197_p3) target bundleno = 184 (0xb8), region = 28 }
   0xc   : > { %v292_v0 = vlaneseq  ;;  %s615_s12 = smov (!%p242_p4, %s531_s12), 1  ;;  %vm281_vm0 = vcmask 523264   ;;  %vm297_vm2 = vcmask 64512   ;;  %v541_v6 = vmov 1.0  }
   0xd   : > { %s479_s16 = sshll.u32 %s615_s12, 3  ;;  %s258_s19 = scalar_lea.vmem %s607_s1, %s615_s12  ;;  %vm276_vm3 = vcmask 516096   ;;  %v542_v15 = vmov 0.0  }
   0xe   : > { %v293_v1 = vshrl.u32 %v292_v0, 7  ;;  %s248_s22 = scalar_lea.vmem %s606_s0, %s479_s16  ;;  %v512_v2 = vld [vmem:[%s258_s19] ss:$0 sm:$0xff]  ;;  %s265_s25 = scalar_lea.vmem %s608_s2, %s615_s12 }
   0xf   : > { %v279_v3 = vld [vmem:[%s248_s22] sm:$0xff]  ;;  %s271_s28 = scalar_lea.vmem %s609_s3, %s615_s12  ;;  %277 = vst.msk [vmem:[%s265_s25] sm:$0x1] %vm276_vm3, %v542_v15 }
  0x10   : > { %v282_v4 = vsel %vm281_vm0, %v279_v3, -inf  ;;  %vm295_vm1 = vcmp.eq.s32.totalorder %v293_v1, %v512_v2  ;;  %v280_v16 = vld [vmem:[%s258_s19] sm:$0x1]  ;;  %278 = vst.msk [vmem:[%s271_s28] sm:$0x1] %vm276_vm3, %v542_v15 }
  0x11   : > { %v283_v5 = vrot.slane %v282_v4, 4  ;;  %481 = vmatpush.msk.msra.mxu1 %vm295_vm1, %v279_v3  ;;  %vm344_vm4 = vcmp.ge.s32.totalorder %v280_v16, 0 }
  0x12   : > { %482 = vmatmul.msk.f32.vlgmr.msra.gmra.mxu1 %vm297_vm2, %v541_v6  ;;  %v483_v17 = vsel %vm344_vm4, 1.0, %v542_v15 }
  0x13   : > { %v284_v7 = vmax.f32 %v282_v4, %v283_v5 }
  0x15   : > { %v285_v8 = vrot.slane %v284_v7, 2 }
  0x16   : > { %v345_v25 = vld [vmem:[%s265_s25] sm:$0x1] }
  0x17   : > { %v286_v9 = vmax.f32 %v284_v7, %v285_v8  ;;  %v351_v18 = vld [vmem:[%s271_s28] sm:$0x1] }
  0x18   : > { %v354_v19 = vadd.f32 %v483_v17, %v351_v18 }
  0x19   : > { %v287_v10 = vrot.slane %v286_v9, 1 }
  0x1a   : > { %355 = vst.msk [vmem:[%s271_s28] sm:$0x1] %vm276_vm3, %v354_v19 }
  0x1b   : > { %v288_v11 = vmax.f32 %v286_v9, %v287_v10 }
  0x1d   : > { %v289_v12 = vsub.f32 %v279_v3, %v288_v11 }
  0x1f   : > { %v290_v13 = vmul.f32 1.442695, %v289_v12 }
  0x21   : > { %513 = vpow2.f32 %v290_v13 }
  0x27   : > { %v514_v14 = vpop.eup %513 }
  0x28   : > { %316 = vmatpush.msra.mxu0 %v514_v14 }
  0x29   : > { %480 = vmatmul.msk.f32.vlgmr.msra.gmra.mxu0 %vm297_vm2, %v541_v6 }
  0x8f   : > { %v338_v23 = vpop.f32.mrf.mxu1 }
  0xa6   : > { %v318_v20 = vpop.f32.mrf.mxu0 }
  0xa7   : > { %515 = vlog2.f32 %v318_v20 }
  0xad   : > { %v516_v21 = vpop.eup %515 }
  0xae   : > { %v342_v22 = vmul.f32 0.6931472, %v516_v21 }
  0xb0   : > { %v343_v24 = vadd.f32 %v342_v22, %v288_v11 }
  0xb2   : > { %v346_v26 = vsub.f32 %v343_v24, %v338_v23 }
  0xb4   : > { %v347_v27 = vsel %vm344_vm4, %v346_v26, 0.0 }
  0xb5   : > { %v348_v28 = vadd.f32 %v347_v27, %v345_v25 }
  0xb7   : > { %350 = vst.msk [vmem:[%s265_s25] sm:$0x1] %vm276_vm3, %v348_v28 }
  0xb8 PF: > { %s14_s14 = sadd.s32 1, %s539_s14   ;;  %s610_s12 = smov %s535_s13 }
  0xb9   : > { %p11_p5 = scmp.ge.s32.totalorder %s14_s14, 4   ;;  %s611_s13 = smov %s613_s15 }
  0xbb   :  { %13 = sbr.rel (!%p11_p5) target bundleno = 2 (0x2), region = 77 }

// kernel: fs_aux_ce_loss.2
= control target key start
LH: loop header
LB: loop body
LE: loop exit
PB: predicated region body
PF: predicated region fallthrough
CT: control target
= control target key end

     0   :  { %s695_s12 = smov 0   ;;  %s697_s13 = smov 0   ;;  %s769_s0 = inlined_call_operand.vmem [shape: f32[2,8,256], index: 0, kind: input, shape index: {}]   ;;  %s770_s1 = inlined_call_operand.vmem [shape: s32[2,1,256], index: 1, kind: input, shape index: {}]   ;;  %s771_s2 = inlined_call_operand.vmem [shape: f32[2,1,1,256], index: 2, kind: output, shape index: {0}]   ;;  %s772_s3 = inlined_call_operand.vmem [shape: f32[2,1,1,256], index: 3, kind: output, shape index: {1}]  }
   0x1   :  { %s699_s14 = smov 0  }
   0x2 LB: > { %s33_s15 = sadd.s32 1, %s667_s13  ;;  %p599_p0 = scmp.ge.s32.totalorder %s671_s14, 1  ;;  %s671_s14 = sphi %s699_s14, %s14_s14   ;;  %s667_s13 = sphi %s697_s13, %s776_s13   ;;  %s663_s12 = sphi %s695_s12, %s775_s12  }
   0x3   : > { %p35_p1 = scmp.ge.s32.totalorder %s33_s15, 2  ;;  %p202_p2 = scmp.lt.s32.totalorder %s671_s14, 3 }
   0x5   : > { %s778_s15 = smov (%p35_p1, %s33_s15), 0  ;;  %p203_p3 = pnand %p599_p0, %p202_p2 }
   0x6   : > { %p257_p4 = scmp.lt.s32.totalorder (!%p203_p3), %s663_s12, 1 }
   0x7   : > { %206 = sbr.rel (%p203_p3) target bundleno = 186 (0xba), region = 28 }
   0xc   : > { %v300_v0 = vlaneseq  ;;  %s780_s12 = smov (!%p257_p4, %s663_s12), 1  ;;  %vm335_vm2 = vcmask 64512   ;;  %v673_v13 = vmov 1.0   ;;  %v674_v27 = vmov 0.0  }
   0xd   : > { %s614_s16 = sshll.u32 %s780_s12, 4  ;;  %s713_s17 = sshll.u32 %s780_s12, 1  ;;  %vm432_vm5 = vcmask 1040384  }
   0xe   : > { %s264_s20 = scalar_lea.vmem %s769_s0, %s614_s16  ;;  %s277_s23 = scalar_lea.vmem %s770_s1, %s713_s17  ;;  %v328_v1 = vshrl.u32 %v300_v0, 7  ;;  %vm736_vm3 = vcmp.lt.s32.totalorder %v300_v0, 256 }
   0xf   : > { %v307_v2 = vld [vmem:[%s264_s20 + $0x8] sm:$0xff]  ;;  %v306_v3 = vld [vmem:[%s264_s20] sm:$0xff]  ;;  %s734_s26 = scalar_lea.vmem %s771_s2, %s713_s17  ;;  %s295_s29 = scalar_lea.vmem %s772_s3, %s713_s17 }
  0x10   : > { %v722_v4 = vld [vmem:[%s277_s23] sm:$0x3]  ;;  %v315_v5 = vrot.slane %v307_v2, 4  ;;  %v309_v6 = vrot.slane %v306_v3, 4  ;;  %304 = vst.msk [vmem:[%s734_s26] sm:$0x3] %vm736_vm3, %v674_v27 }
  0x11   : > { %v330_v7 = vperm.slane %v722_v4, 1  ;;  %v329_v8 = vperm.slane %v722_v4, 0  ;;  %305 = vst.msk [vmem:[%s295_s29] sm:$0x3] %vm736_vm3, %v674_v27  ;;  %vm425_vm4 = vcmp.ge.s32.totalorder %v722_v4, 0 }
  0x12   : > { %v316_v9 = vmax.f32 %v307_v2, %v315_v5  ;;  %v310_v10 = vmax.f32 %v306_v3, %v309_v6  ;;  %v611_v28 = vsel %vm425_vm4, 1.0, %v674_v27 }
  0x13   : > { %vm332_vm0 = vcmp.eq.s32.totalorder %v328_v1, %v330_v7  ;;  %vm331_vm1 = vcmp.eq.s32.totalorder %v328_v1, %v329_v8 }
  0x14   : > { %609 = vmatpush.msk.msra.mxu3 %vm332_vm0, %v307_v2  ;;  %607 = vmatpush.msk.msra.mxu2 %vm331_vm1, %v306_v3  ;;  %v317_v11 = vrot.slane %v316_v9, 2  ;;  %v311_v12 = vrot.slane %v310_v10, 2 }
  0x15   : > { %610 = vmatmul.msk.f32.vlgmr.msra.gmra.mxu3 %vm335_vm2, %v673_v13  ;;  %608 = vmatmul.msk.f32.vlgmr.msra.gmra.mxu2 %vm335_vm2, %v673_v13 }
  0x16   : > { %v318_v14 = vmax.f32 %v316_v9, %v317_v11  ;;  %v312_v15 = vmax.f32 %v310_v10, %v311_v12 }
  0x17   : > { %v426_v44 = vld [vmem:[%s734_s26] sm:$0x3] }
  0x18   : > { %v319_v16 = vrot.slane %v318_v14, 1  ;;  %v313_v17 = vrot.slane %v312_v15, 1  ;;  %v442_v29 = vld [vmem:[%s295_s29] sm:$0x3] }
  0x19   : > { %v445_v30 = vadd.f32 %v611_v28, %v442_v29 }
  0x1a   : > { %v320_v18 = vmax.f32 %v318_v14, %v319_v16  ;;  %v314_v19 = vmax.f32 %v312_v15, %v313_v17 }
  0x1b   : > { %446 = vst.msk [vmem:[%s295_s29] sm:$0x3] %vm736_vm3, %v445_v30 }
  0x1c   : > { %v322_v20 = vsub.f32 %v307_v2, %v320_v18  ;;  %v321_v21 = vsub.f32 %v306_v3, %v314_v19 }
  0x1e   : > { %v325_v22 = vmul.f32 1.442695, %v322_v20  ;;  %v323_v23 = vmul.f32 1.442695, %v321_v21 }
  0x20   : > { %641 = vpow2.f32 %v325_v22 }
  0x21   : > { %643 = vpow2.f32 %v323_v23 }
  0x26   : > { %v642_v24 = vpop.eup %641 }
  0x27   : > { %v644_v25 = vpop.eup %643  ;;  %374 = vmatpush.msra.mxu1 %v642_v24 }
  0x28   : > { %606 = vmatmul.msk.f32.vlgmr.msra.gmra.mxu1 %vm335_vm2, %v673_v13  ;;  %354 = vmatpush.msra.mxu0 %v644_v25 }
  0x29   : > { %605 = vmatmul.msk.f32.vlgmr.msra.gmra.mxu0 %vm335_vm2, %v673_v13 }
  0x98   : > { %v416_v37 = vpop.f32.mrf.mxu3  ;;  %v396_v39 = vpop.f32.mrf.mxu2 }
  0xa5   : > { %v376_v31 = vpop.f32.mrf.mxu1 }
  0xa6   : > { %645 = vlog2.f32 %v376_v31  ;;  %v356_v32 = vpop.f32.mrf.mxu0 }
  0xa7   : > { %647 = vlog2.f32 %v356_v32 }
  0xac   : > { %v646_v33 = vpop.eup %645 }
  0xad   : > { %v648_v34 = vpop.eup %647  ;;  %v422_v35 = vmul.f32 0.6931472, %v646_v33 }
  0xae   : > { %v420_v36 = vmul.f32 0.6931472, %v648_v34 }
  0xaf   : > { %v424_v38 = vadd.f32 %v422_v35, %v320_v18 }
  0xb0   : > { %v423_v40 = vadd.f32 %v420_v36, %v314_v19 }
  0xb1   : > { %v428_v41 = vsub.f32 %v424_v38, %v416_v37 }
  0xb2   : > { %v427_v42 = vsub.f32 %v423_v40, %v396_v39 }
  0xb3   : > { %v431_v43 = vrot.slane %v428_v41, 7 }
  0xb5   : > { %v433_v45 = vsel %vm432_vm5, %v427_v42, %v431_v43 }
  0xb6   : > { %v435_v46 = vsel %vm425_vm4, %v433_v45, 0.0 }
  0xb7   : > { %v436_v47 = vadd.f32 %v435_v46, %v426_v44 }
  0xb9   : > { %441 = vst.msk [vmem:[%s734_s26] sm:$0x3] %vm736_vm3, %v436_v47 }
  0xba PF: > { %s14_s14 = sadd.s32 1, %s671_s14   ;;  %s775_s12 = smov %s667_s13 }
  0xbb   : > { %p11_p5 = scmp.ge.s32.totalorder %s14_s14, 4   ;;  %s776_s13 = smov %s778_s15 }
  0xbd   :  { %13 = sbr.rel (!%p11_p5) target bundleno = 2 (0x2), region = 77 }

</bundles_post_ra>
